<compile_context>
chip_gen: v7x
topology: tpu7x:2x2x1
jax: 0.10.0
libtpu: 0.0.40
codegen_flags: <defaults>
</compile_context>

<pallas_src>
import functools

import jax
import jax.numpy as jnp
from jax import lax
from jax.experimental import pallas as pl
from jax.experimental.pallas import tpu as pltpu


def _gated_sum_proj_kernel(x_ref, w1_ref, b1_ref, w2_ref, b2_ref,
                           wm_ref, bm_ref, o_ref, *, s_valid):
    tb, s_pad, h = x_ref.shape
    hops = wm_ref.shape[0]

    x = x_ref[...]                                          # (TB, Sp, H)

    # --- self_weight_mlp: Linear(H->mid) + ReLU (+ dropout: eval no-op) ----
    # (TB, Sp, H) -> (TB*Sp, H): Sp % 8 == 0, so this is a layout-preserving
    # leading-dim merge; the MXU sees M = TB*Sp rows in one matmul.
    x2 = x.reshape(tb * s_pad, h)
    hid = jnp.dot(x2, w1_ref[...], preferred_element_type=jnp.float32)
    hid = jnp.maximum(hid + b1_ref[...], 0.0)               # (TB*Sp, mid)

    logits = jnp.dot(hid, w2_ref[...], preferred_element_type=jnp.float32)
    logits = (logits + b2_ref[...]).reshape(tb, s_pad, hops)

    # --- softmax over the sequence axis (PyTorch dim=1) ---------------------
    m = jnp.max(logits, axis=1, keepdims=True)
    e = jnp.exp(logits - m)                                 # (TB, Sp, hops)
    if s_valid != s_pad:                                    # mask pad rows
        seq_id = lax.broadcasted_iota(jnp.int32, (s_pad, hops), 0)
        e = jnp.where((seq_id < s_valid)[None], e, 0.0)
    inv = pl.reciprocal(jnp.sum(e, axis=1, keepdims=True), approx=True)
    att = e * inv                                           # (TB, Sp, hops)

    # --- per-hop weighted sum over S (VPU) fused with the merge matmul ------
    acc = bm_ref[...].astype(jnp.float32)                   # (1, OUTp)
    for p in range(hops):                                   # hops is tiny (3)
        ws_p = jnp.sum(att[:, :, p:p + 1] * x, axis=1)      # (TB, H)
        acc = acc + jnp.dot(ws_p, wm_ref[p],
                            preferred_element_type=jnp.float32)  # (TB, OUTp)
    o_ref[...] = acc.astype(o_ref.dtype)


def _choose_batch_tile(batch):
    """Pick (tile_rows, padded_batch). Keep >=2 grid steps when possible so
    the 'parallel' batch axis can shard across v7x's two TensorCores, and
    sublane-align the tile so the output store is dense."""
    if batch <= 8:
        return batch, batch
    max_tb = 512                       # ~1 MiB x-tile; far under VMEM limits
    n_steps = max(2, -(-batch // max_tb))
    tb = -(-batch // n_steps)
    tb = ((tb + 7) // 8) * 8
    return tb, tb * n_steps


def gated_element_sum_proj(x, w1, b1, w2, b2, wm, bm):
    """x: (B, S, H); w1: (H, mid); b1: (1, mid); w2: (mid, hops);
    b2: (1, hops); wm: (hops, H, out); bm: (1, out).  Returns (B, out)."""
    B, S, H = x.shape
    mid = w1.shape[1]
    hops = w2.shape[1]
    out_dim = wm.shape[2]

    s_pad = ((S + 7) // 8) * 8                    # sublane-aligned sequence
    out_pad = ((out_dim + 127) // 128) * 128      # lane-dense output stores
    tb, b_pad = _choose_batch_tile(B)
    grid = b_pad // tb

    x_p = x
    if b_pad != B or s_pad != S:
        x_p = jnp.pad(x, ((0, b_pad - B), (0, s_pad - S), (0, 0)))
    if out_pad != out_dim:
        wm_p = jnp.pad(wm, ((0, 0), (0, 0), (0, out_pad - out_dim)))
        bm_p = jnp.pad(bm, ((0, 0), (0, out_pad - out_dim)))
    else:
        wm_p, bm_p = wm, bm

    kernel = functools.partial(_gated_sum_proj_kernel, s_valid=S)

    out = pl.pallas_call(
        kernel,
        out_shape=jax.ShapeDtypeStruct((b_pad, out_pad), jnp.float32),
        grid_spec=pltpu.PrefetchScalarGridSpec(
            num_scalar_prefetch=0,
            grid=(grid,),
            in_specs=[
                pl.BlockSpec((tb, s_pad, H), lambda b: (b, 0, 0)),     # x
                pl.BlockSpec((H, mid), lambda b: (0, 0)),              # w1
                pl.BlockSpec((1, mid), lambda b: (0, 0)),              # b1
                pl.BlockSpec((mid, hops), lambda b: (0, 0)),           # w2
                pl.BlockSpec((1, hops), lambda b: (0, 0)),             # b2
                pl.BlockSpec((hops, H, out_pad), lambda b: (0, 0, 0)), # wm
                pl.BlockSpec((1, out_pad), lambda b: (0, 0)),          # bm
            ],
            out_specs=pl.BlockSpec((tb, out_pad), lambda b: (b, 0)),
        ),
        compiler_params=pltpu.CompilerParams(
            dimension_semantics=("parallel",)),
    )(x_p, w1, b1, w2, b2, wm_p, bm_p)

    return out[:B, :out_dim]


def _reference(x, w1, b1, w2, b2, wm, bm):
    """Pure-JAX reference mirroring the PyTorch forward (eval mode)."""
    h = jnp.maximum(jnp.einsum("bsh,hm->bsm", x, w1) + b1, 0.0)
    att = jnp.einsum("bsm,mp->bsp", h, w2) + b2               # (B, S, hops)
    att = jax.nn.softmax(att, axis=1)
    ws = jnp.einsum("bsp,bsh->bph", att, x)                   # (B, hops, H)
    # hop-major concat == reshape of (B, hops, H); wm is (hops, H, out)
    return jnp.einsum("bph,pho->bo", ws, wm) + bm


if __name__ == "__main__":
    # config: hidden_dim=32, flat_mid_dim=16, flat_hops=3, flat_out_dim=64
    B, S, H = 2, 14, 32
    MID, HOPS, OUT = 16, 3, 64

    key = jax.random.PRNGKey(0)
    ks = jax.random.split(key, 7)
    x = jax.random.normal(ks[0], (B, S, H), dtype=jnp.float32)

    # Deterministic synthetic parameters (shapes implied by the module's
    # __init__).  PyTorch-equivalent linear_merge weight (OUT, H*HOPS) is
    # wm.reshape(HOPS*H, OUT).T -- stored pre-transposed & hop-split here.
    w1 = jax.random.normal(ks[1], (H, MID), dtype=jnp.float32) * 0.1
    b1 = jax.random.normal(ks[2], (1, MID), dtype=jnp.float32) * 0.1
    w2 = jax.random.normal(ks[3], (MID, HOPS), dtype=jnp.float32) * 0.1
    b2 = jax.random.normal(ks[4], (1, HOPS), dtype=jnp.float32) * 0.1
    wm = jax.random.normal(ks[5], (HOPS, H, OUT), dtype=jnp.float32) * 0.1
    bm = jax.random.normal(ks[6], (1, OUT), dtype=jnp.float32) * 0.1

    out = gated_element_sum_proj(x, w1, b1, w2, b2, wm, bm)
    out = jax.block_until_ready(out)

    ref = _reference(x, w1, b1, w2, b2, wm, bm)
    assert out.shape == (B, OUT)
    # slightly relaxed tolerance: approx (EUP) reciprocal in the softmax denom
    err = float(jnp.max(jnp.abs(out - ref)))
    assert err < 5e-3, f"max abs err = {err}"

    print("KERNEL_OK")
</pallas_src>

<mosaic_0001>
module attributes {stable_mosaic.version = 11 : i64} {
  func.func @_gated_sum_proj_kernel(%arg0: i32, %arg1: memref<2x16x32xf32, #tpu.memory_space<vmem>>, %arg2: memref<32x16xf32, #tpu.memory_space<vmem>>, %arg3: memref<1x16xf32, #tpu.memory_space<vmem>>, %arg4: memref<16x3xf32, #tpu.memory_space<vmem>>, %arg5: memref<1x3xf32, #tpu.memory_space<vmem>>, %arg6: memref<3x32x128xf32, #tpu.memory_space<vmem>>, %arg7: memref<1x128xf32, #tpu.memory_space<vmem>>, %arg8: memref<2x128xf32, #tpu.memory_space<vmem>>) attributes {dimension_semantics = [#tpu.dimension_semantics<parallel>], iteration_bounds = array<i64: 1>, scalar_prefetch = 0 : i64, scratch_operands = 0 : i64, tpu.core_type = #tpu.core_type<tc>, window_params = [{transform_indices = @transform_0, window_bounds = array<i64: 2, 16, 32>}, {pipeline_mode = #tpu.pipeline_mode<synchronous>, transform_indices = @transform_1, window_bounds = array<i64: 32, 16>}, {pipeline_mode = #tpu.pipeline_mode<synchronous>, transform_indices = @transform_2, window_bounds = array<i64: 1, 16>}, {pipeline_mode = #tpu.pipeline_mode<synchronous>, transform_indices = @transform_3, window_bounds = array<i64: 16, 3>}, {pipeline_mode = #tpu.pipeline_mode<synchronous>, transform_indices = @transform_4, window_bounds = array<i64: 1, 3>}, {pipeline_mode = #tpu.pipeline_mode<synchronous>, transform_indices = @transform_5, window_bounds = array<i64: 3, 32, 128>}, {pipeline_mode = #tpu.pipeline_mode<synchronous>, transform_indices = @transform_6, window_bounds = array<i64: 1, 128>}, {transform_indices = @transform_7, window_bounds = array<i64: 2, 128>}]} {
    %c0 = arith.constant 0 : index
    %c0_0 = arith.constant 0 : index
    %c0_1 = arith.constant 0 : index
    %0 = vector.load %arg1[%c0, %c0_0, %c0_1] : memref<2x16x32xf32, #tpu.memory_space<vmem>>, vector<2x16x32xf32>
    %1 = vector.shape_cast %0 : vector<2x16x32xf32> to vector<32x32xf32>
    %c0_2 = arith.constant 0 : index
    %c0_3 = arith.constant 0 : index
    %2 = vector.load %arg2[%c0_2, %c0_3] : memref<32x16xf32, #tpu.memory_space<vmem>>, vector<32x16xf32>
    %cst = arith.constant dense<0.000000e+00> : vector<32x16xf32>
    %3 = tpu.matmul %1, %2, %cst {dimension_numbers = #tpu.dot_dimension_numbers<[1], [0], [0], [1], [0, 0, 1, 1], [], []>} : vector<32x32xf32>, vector<32x16xf32>, vector<32x16xf32> -> vector<32x16xf32>
    %c0_4 = arith.constant 0 : index
    %c0_5 = arith.constant 0 : index
    %4 = vector.load %arg3[%c0_4, %c0_5] : memref<1x16xf32, #tpu.memory_space<vmem>>, vector<1x16xf32>
    %5 = vector.broadcast %4 : vector<1x16xf32> to vector<32x16xf32>
    %6 = arith.addf %3, %5 : vector<32x16xf32>
    %cst_6 = arith.constant 0.000000e+00 : f32
    %7 = vector.broadcast %cst_6 : f32 to vector<32x16xf32>
    %8 = arith.maximumf %6, %7 : vector<32x16xf32>
    %c0_7 = arith.constant 0 : index
    %c0_8 = arith.constant 0 : index
    %9 = vector.load %arg4[%c0_7, %c0_8] : memref<16x3xf32, #tpu.memory_space<vmem>>, vector<16x3xf32>
    %cst_9 = arith.constant dense<0.000000e+00> : vector<32x3xf32>
    %10 = tpu.matmul %8, %9, %cst_9 {dimension_numbers = #tpu.dot_dimension_numbers<[1], [0], [0], [1], [0, 0, 1, 1], [], []>} : vector<32x16xf32>, vector<16x3xf32>, vector<32x3xf32> -> vector<32x3xf32>
    %c0_10 = arith.constant 0 : index
    %c0_11 = arith.constant 0 : index
    %11 = vector.load %arg5[%c0_10, %c0_11] : memref<1x3xf32, #tpu.memory_space<vmem>>, vector<1x3xf32>
    %12 = vector.broadcast %11 : vector<1x3xf32> to vector<32x3xf32>
    %13 = arith.addf %10, %12 : vector<32x3xf32>
    %14 = vector.shape_cast %13 : vector<32x3xf32> to vector<2x16x3xf32>
    %cst_12 = arith.constant dense<0xFF800000> : vector<2x3xf32>
    %15 = vector.multi_reduction <maximumf>, %14, %cst_12 [1] : vector<2x16x3xf32> to vector<2x3xf32>
    %16 = vector.shape_cast %15 : vector<2x3xf32> to vector<2x1x3xf32>
    %17 = vector.broadcast %16 : vector<2x1x3xf32> to vector<2x16x3xf32>
    %18 = arith.subf %14, %17 : vector<2x16x3xf32>
    %19 = math.exp %18 : vector<2x16x3xf32>
    %20 = tpu.iota {dimensions = array<i32: 0>} : vector<16x3xi32>
    %c14_i32 = arith.constant 14 : i32
    %21 = vector.broadcast %c14_i32 : i32 to vector<16x3xi32>
    %22 = arith.cmpi slt, %20, %21 : vector<16x3xi32>
    %23 = vector.shape_cast %22 : vector<16x3xi1> to vector<1x16x3xi1>
    %cst_13 = arith.constant 0.000000e+00 : f32
    %24 = vector.shape_cast %23 : vector<1x16x3xi1> to vector<1x16x3xi1>
    %25 = vector.broadcast %24 : vector<1x16x3xi1> to vector<2x16x3xi1>
    %26 = vector.broadcast %cst_13 : f32 to vector<2x16x3xf32>
    %27 = arith.select %25, %19, %26 : vector<2x16x3xi1>, vector<2x16x3xf32>
    %cst_14 = arith.constant dense<0.000000e+00> : vector<2x3xf32>
    %28 = vector.multi_reduction <add>, %27, %cst_14 [1] : vector<2x16x3xf32> to vector<2x3xf32>
    %29 = vector.shape_cast %28 : vector<2x3xf32> to vector<2x1x3xf32>
    %30 = tpu.reciprocal %29 {approx = true} : vector<2x1x3xf32> -> vector<2x1x3xf32>
    %31 = vector.broadcast %30 : vector<2x1x3xf32> to vector<2x16x3xf32>
    %32 = arith.mulf %27, %31 : vector<2x16x3xf32>
    %c0_15 = arith.constant 0 : index
    %c0_16 = arith.constant 0 : index
    %33 = vector.load %arg7[%c0_15, %c0_16] : memref<1x128xf32, #tpu.memory_space<vmem>>, vector<1x128xf32>
    %34 = vector.extract_strided_slice %32 {offsets = [0, 0, 0], sizes = [2, 16, 1], strides = [1, 1, 1]} : vector<2x16x3xf32> to vector<2x16x1xf32>
    %35 = vector.broadcast %34 : vector<2x16x1xf32> to vector<2x16x32xf32>
    %36 = arith.mulf %35, %0 : vector<2x16x32xf32>
    %cst_17 = arith.constant dense<0.000000e+00> : vector<2x32xf32>
    %37 = vector.multi_reduction <add>, %36, %cst_17 [1] : vector<2x16x32xf32> to vector<2x32xf32>
    %c0_18 = arith.constant 0 : index
    %c0_19 = arith.constant 0 : index
    %c0_20 = arith.constant 0 : index
    %38 = vector.load %arg6[%c0_18, %c0_19, %c0_20] : memref<3x32x128xf32, #tpu.memory_space<vmem>>, vector<1x32x128xf32>
    %39 = vector.shape_cast %38 : vector<1x32x128xf32> to vector<32x128xf32>
    %cst_21 = arith.constant dense<0.000000e+00> : vector<2x128xf32>
    %40 = tpu.matmul %37, %39, %cst_21 {dimension_numbers = #tpu.dot_dimension_numbers<[1], [0], [0], [1], [0, 0, 1, 1], [], []>} : vector<2x32xf32>, vector<32x128xf32>, vector<2x128xf32> -> vector<2x128xf32>
    %41 = vector.broadcast %33 : vector<1x128xf32> to vector<2x128xf32>
    %42 = arith.addf %41, %40 : vector<2x128xf32>
    %43 = vector.extract_strided_slice %32 {offsets = [0, 0, 1], sizes = [2, 16, 1], strides = [1, 1, 1]} : vector<2x16x3xf32> to vector<2x16x1xf32>
    %44 = vector.broadcast %43 : vector<2x16x1xf32> to vector<2x16x32xf32>
    %45 = arith.mulf %44, %0 : vector<2x16x32xf32>
    %cst_22 = arith.constant dense<0.000000e+00> : vector<2x32xf32>
    %46 = vector.multi_reduction <add>, %45, %cst_22 [1] : vector<2x16x32xf32> to vector<2x32xf32>
    %c1 = arith.constant 1 : index
    %c0_23 = arith.constant 0 : index
    %c0_24 = arith.constant 0 : index
    %47 = vector.load %arg6[%c1, %c0_23, %c0_24] : memref<3x32x128xf32, #tpu.memory_space<vmem>>, vector<1x32x128xf32>
    %48 = vector.shape_cast %47 : vector<1x32x128xf32> to vector<32x128xf32>
    %cst_25 = arith.constant dense<0.000000e+00> : vector<2x128xf32>
    %49 = tpu.matmul %46, %48, %cst_25 {dimension_numbers = #tpu.dot_dimension_numbers<[1], [0], [0], [1], [0, 0, 1, 1], [], []>} : vector<2x32xf32>, vector<32x128xf32>, vector<2x128xf32> -> vector<2x128xf32>
    %50 = arith.addf %42, %49 : vector<2x128xf32>
    %51 = vector.extract_strided_slice %32 {offsets = [0, 0, 2], sizes = [2, 16, 1], strides = [1, 1, 1]} : vector<2x16x3xf32> to vector<2x16x1xf32>
    %52 = vector.broadcast %51 : vector<2x16x1xf32> to vector<2x16x32xf32>
    %53 = arith.mulf %52, %0 : vector<2x16x32xf32>
    %cst_26 = arith.constant dense<0.000000e+00> : vector<2x32xf32>
    %54 = vector.multi_reduction <add>, %53, %cst_26 [1] : vector<2x16x32xf32> to vector<2x32xf32>
    %c2 = arith.constant 2 : index
    %c0_27 = arith.constant 0 : index
    %c0_28 = arith.constant 0 : index
    %55 = vector.load %arg6[%c2, %c0_27, %c0_28] : memref<3x32x128xf32, #tpu.memory_space<vmem>>, vector<1x32x128xf32>
    %56 = vector.shape_cast %55 : vector<1x32x128xf32> to vector<32x128xf32>
    %cst_29 = arith.constant dense<0.000000e+00> : vector<2x128xf32>
    %57 = tpu.matmul %54, %56, %cst_29 {dimension_numbers = #tpu.dot_dimension_numbers<[1], [0], [0], [1], [0, 0, 1, 1], [], []>} : vector<2x32xf32>, vector<32x128xf32>, vector<2x128xf32> -> vector<2x128xf32>
    %58 = arith.addf %50, %57 : vector<2x128xf32>
    %c0_30 = arith.constant 0 : index
    %c0_31 = arith.constant 0 : index
    %59 = vector.load %arg8[%c0_30, %c0_31] : memref<2x128xf32, #tpu.memory_space<vmem>>, vector<2x128xf32>
    tpu.vector_store %arg8[%c0_30, %c0_31], %58 {strides = array<i32>} : memref<2x128xf32, #tpu.memory_space<vmem>>, vector<2x128xf32>,
    return
  }
  func.func @transform_0(%arg0: i32) -> (i32, i32, i32) {
    %c0_i32 = arith.constant 0 : i32
    %c0_i32_0 = arith.constant 0 : i32
    %c0_i32_1 = arith.constant 0 : i32
    return %arg0, %c0_i32, %c0_i32_0 : i32, i32, i32
  }
  func.func @transform_1(%arg0: i32) -> (i32, i32) {
    %c0_i32 = arith.constant 0 : i32
    %c0_i32_0 = arith.constant 0 : i32
    %c0_i32_1 = arith.constant 0 : i32
    return %c0_i32, %c0_i32_0 : i32, i32
  }
  func.func @transform_2(%arg0: i32) -> (i32, i32) {
    %c0_i32 = arith.constant 0 : i32
    %c0_i32_0 = arith.constant 0 : i32
    %c0_i32_1 = arith.constant 0 : i32
    return %c0_i32, %c0_i32_0 : i32, i32
  }
  func.func @transform_3(%arg0: i32) -> (i32, i32) {
    %c0_i32 = arith.constant 0 : i32
    %c0_i32_0 = arith.constant 0 : i32
    %c0_i32_1 = arith.constant 0 : i32
    return %c0_i32, %c0_i32_0 : i32, i32
  }
  func.func @transform_4(%arg0: i32) -> (i32, i32) {
    %c0_i32 = arith.constant 0 : i32
    %c0_i32_0 = arith.constant 0 : i32
    %c0_i32_1 = arith.constant 0 : i32
    return %c0_i32, %c0_i32_0 : i32, i32
  }
  func.func @transform_5(%arg0: i32) -> (i32, i32, i32) {
    %c0_i32 = arith.constant 0 : i32
    %c0_i32_0 = arith.constant 0 : i32
    %c0_i32_1 = arith.constant 0 : i32
    %c0_i32_2 = arith.constant 0 : i32
    return %c0_i32, %c0_i32_0, %c0_i32_1 : i32, i32, i32
  }
  func.func @transform_6(%arg0: i32) -> (i32, i32) {
    %c0_i32 = arith.constant 0 : i32
    %c0_i32_0 = arith.constant 0 : i32
    %c0_i32_1 = arith.constant 0 : i32
    return %c0_i32, %c0_i32_0 : i32, i32
  }
  func.func @transform_7(%arg0: i32) -> (i32, i32) {
    %c0_i32 = arith.constant 0 : i32
    %c0_i32_0 = arith.constant 0 : i32
    return %arg0, %c0_i32 : i32, i32
  }
}

</mosaic_0001>

<bundles_post_ra>
// kernel: tpu_custom_call.1
= control target key start
LH: loop header
LB: loop body
LE: loop exit
PB: predicated region body
PF: predicated region fallthrough
CT: control target
= control target key end

     0   :  { %12 = vsyncpa [#allocation3], 0  ;;  %s1113_s0 = inlined_call_operand.vmem [shape: f32[2,16,32], index: 0, kind: input, shape index: {}]   ;;  %s1114_s1 = inlined_call_operand.vmem [shape: f32[32,16], index: 1, kind: input, shape index: {}]   ;;  %s1115_s2 = inlined_call_operand.vmem [shape: f32[1,16], index: 2, kind: input, shape index: {}]   ;;  %s1116_s3 = inlined_call_operand.vmem [shape: f32[16,3], index: 3, kind: input, shape index: {}]   ;;  %s1117_s4 = inlined_call_operand.vmem [shape: f32[1,3], index: 4, kind: input, shape index: {}]   ;;  %s1118_s5 = inlined_call_operand.hbm [shape: f32[3,32,128], index: 5, kind: input, shape index: {}]   ;;  %s1119_s6 = inlined_call_operand.vmem [shape: f32[1,128], index: 6, kind: input, shape index: {}]   ;;  %s1120_s7 = inlined_call_operand.hbm [shape: f32[2,128], index: 7, kind: output, shape index: {}]  }
   0x1   :  { %13 = vsyncpa [#allocation4], 0  ;;  %s929_s24 = smov [#allocation2]   ;;  %s881_s28 = scalar_lea.hbm %s1118_s5, 1536 }
   0x2   :  { %s29_s25 = sshll.u32 %s929_s24, 4  ;;  %p882_p0 = scmp.ne.s32.totalorder %s1118_s5, %s881_s28  ;;  %s30_s25 = int_to_ptr.vmem [resolvable:$true] %s29_s25 }
   0x3   :  { %p885_p1 = scmp.lt.u32.totalorder %s881_s28, %s1118_s5 }
   0x5   :  { %p887_p2 = pnand %p885_p1, %p882_p0 }
   0x7   :  { %890 = shalt.err (!%p887_p2)
}
   0x8   :  { %s891_s10 = scalar_lea.vmem %s30_s25, 1536  ;;  %p896_p4 = scmp.lt.s32.totalorder %s30_s25, %s30_s25 }
   0x9   :  { %p892_p3 = scmp.ne.s32.totalorder %s30_s25, %s891_s10  ;;  %p897_p5 = scmp.lt.s32.totalorder %s891_s10, %s891_s10 }
   0xb   :  { %p898_p6 = por %p897_p5, %p896_p4 }
   0xd   :  { %p899_p7 = pnand %p898_p6, %p892_p3 }
   0xf   :  { %902 = shalt.err (!%p899_p7)
}
  0x10   :  { %s930_s11 = smov 128   ;;  %s931_s12 = smov 8  }
  0x11   :  { %35 = dma.hbm_to_vmem [thread:$0]  %s1118_s5, 1536, %s30_s25, [#allocation3], %s930_s11, %s930_s11, %s931_s12  }
  0x12   :  { %925 = dma.done.wait [#allocation3], 1536  }
  0x13   :  { %926 = vsyncadd [#allocation3], 4294965760  ;;  %vm56_vm0 = vcmask 261120   ;;  %v45_v0 = vld [vmem:[%s1114_s1] sm:$0xff]  ;;  %v46_v1 = vld [vmem:[%s1114_s1 + $0x8] sm:$0xff]  ;;  %vm167_vm1 = vcmask 130048   ;;  %v296_v56 = vlaneseq }
  0x14   :  { %v47_v2 = vld [vmem:[%s1114_s1 + $0x10] sm:$0xff]  ;;  %v817_v3 = vpack.c.bf16 %v46_v1, %v45_v0  ;;  %v48_v4 = vld [vmem:[%s1114_s1 + $0x18] sm:$0xff]  ;;  %v1006_v5 = vld [vmem:[%s1113_s0] sm:$0xff]  ;;  %v932_v26 = vmov 1   ;;  %v933_v27 = vmov 0   ;;  %vm265_vm2 = vcmask 23552  }
  0x15   :  { %v821_v6 = vpack.c.bf16 %v48_v4, %v47_v2  ;;  %768 = vmatprep.mubr.msk.f32.mxu0 %vm56_vm0, %v1006_v5  ;;  %v1013_v7 = vld [vmem:[%s1113_s0 + $0x8] sm:$0xff]  ;;  %v1018_v8 = vld [vmem:[%s1113_s0 + $0x10] sm:$0xff]  ;;  %v1027_v9 = vld [vmem:[%s1113_s0 + $0x18] sm:$0xff]  ;;  %861 = vset.pattern.permute.xlu0 %v932_v26  ;;  %v297_v62 = vshrl.u32 %v296_v56, 7  ;;  %vm936_vm4 = vmmov 0   ;;  %vm382_vm5 = vcmask 1041409  }
  0x16   :  { %818 = vmatprep.subr.bf16.mxu0 %v817_v3  ;;  %v158_v10 = vld [vmem:[%s1116_s3] sm:$0xff]  ;;  %v159_v11 = vld [vmem:[%s1116_s3 + $0x8] sm:$0xff]  ;;  %863 = vset.pattern.permute.xlu1 %v933_v27  ;;  %s938_s12 = smov [#allocation5]  }
  0x17   :  { %820 = vmatpush3.bf16.msra.mxu0 %v817_v3  ;;  %v825_v12 = vpack.c.bf16 %v159_v11, %v158_v10  ;;  %v717_v13 = vld [vmem:[%s1115_s2] ss:$0 sm:$0xff]  ;;  %v298_v1 = vadd.s32 8, %v297_v62  ;;  %s708_s13 = sshll.u32 %s938_s12, 4  ;;  %s709_s13 = int_to_ptr.vmem [resolvable:$true] %s708_s13 }
  0x18   :  { %822 = vmatprep.subr.bf16.mxu0 %v821_v6  ;;  %v722_v28 = vld [vmem:[%s1117_s4] ss:$0 sm:$0xff]  ;;  %s903_s14 = scalar_lea.vmem %s709_s13, 32  ;;  %p908_p9 = scmp.lt.s32.totalorder %s709_s13, %s709_s13 }
  0x19   :  { %826 = vmatprep.subr.bf16.mxu1 %v825_v12  ;;  %vm300_vm3 = vcmp.lt.s32.totalorder %v298_v1, 14  ;;  %p904_p8 = scmp.ne.s32.totalorder %s709_s13, %s903_s14  ;;  %p909_p10 = scmp.lt.s32.totalorder %s903_s14, %s903_s14 }
  0x1a   :  { %828 = vmatpush3.bf16.msra.mxu1 %v825_v12 }
  0x1b   :  { %824 = vmatpush3.bf16.msra.mxu0 %v821_v6  ;;  %p910_p11 = por %p909_p10, %p908_p9 }
  0x1d   :  { %p911_p12 = pnand %p910_p11, %p904_p8 }
  0x1e   :  { %769 = vmatmul.mubr.msk.f32.vlgmr.msra.gmra.mrb[0].mxu0 %vm56_vm0, %v1013_v7 }
  0x1f   :  { %771 = vmatprep.mubr.msk.f32.mxu0 %vm56_vm0, %v1018_v8 }
  0x22   :  { %772 = vmatmul.mubr.msk.f32.gmra.mrb[2].mxu0 %vm56_vm0, %v1027_v9 }
  0xf1   :  { %v770_v14 = vpop.f32.mrb[0].mxu0 }
  0xf2   :  { %v141_v15 = vadd.f32 %v770_v14, %v717_v13  ;;  %v135_v16 = vpop.f32.mrb[1].mxu0 }
  0xf3   :  { %v136_v17 = vadd.f32 %v717_v13, %v135_v16 }
  0xf4   :  { %v155_v20 = vmax.f32 %v141_v15, 0.0 }
  0xf5   :  { %v154_v18 = vmax.f32 %v136_v17, 0.0  ;;  %v773_v19 = vpop.f32.mrb[2].mxu0 }
  0xf6   :  { %v151_v21 = vadd.f32 %v773_v19, %v717_v13  ;;  %v145_v22 = vpop.f32.mrb[3].mxu0 }
  0xf7   :  { %v146_v23 = vadd.f32 %v717_v13, %v145_v22  ;;  %778 = vmatprep.mubr.msk.f32.mxu1 %vm167_vm1, %v154_v18 }
  0xf8   :  { %v157_v24 = vmax.f32 %v151_v21, 0.0  ;;  %779 = vmatmul.mubr.msk.f32.vlgmr.msra.gmra.mrb[0].mxu1 %vm167_vm1, %v155_v20 }
  0xf9   :  { %v156_v25 = vmax.f32 %v146_v23, 0.0 }
  0xfb   :  { %781 = vmatprep.mubr.msk.f32.mxu1 %vm167_vm1, %v156_v25 }
  0xfc   :  { %782 = vmatmul.mubr.msk.f32.gmra.mrb[2].mxu1 %vm167_vm1, %v157_v24 }
 0x1cb   :  { %v780_v29 = vpop.f32.mrb[0].mxu1 }
 0x1cc   :  { %v252_v30 = vadd.f32 %v780_v29, %v722_v28  ;;  %v246_v31 = vpop.f32.mrb[1].mxu1 }
 0x1cd   :  { %v247_v32 = vadd.f32 %v722_v28, %v246_v31 }
 0x1ce   :  { %v267_v33 = vsel %vm265_vm2, %v252_v30, -inf }
 0x1cf   :  { %v266_v34 = vsel %vm265_vm2, %v247_v32, -inf  ;;  %v783_v35 = vpop.f32.mrb[2].mxu1 }
 0x1d0   :  { %v268_v36 = vmax.f32 %v266_v34, %v267_v33  ;;  %v262_v37 = vadd.f32 %v783_v35, %v722_v28  ;;  %v256_v38 = vpop.f32.mrb[3].mxu1 }
 0x1d1   :  { %v257_v39 = vadd.f32 %v722_v28, %v256_v38  ;;  %v934_v38 = vmov 2  }
 0x1d2   :  { %v269_v40 = vrot.slane %v268_v36, 4  ;;  %v276_v41 = vsel %vm265_vm2, %v262_v37, -inf }
 0x1d3   :  { %v275_v42 = vsel %vm265_vm2, %v257_v39, -inf }
 0x1d4   :  { %v270_v43 = vmax.f32 %v268_v36, %v269_v40  ;;  %v277_v44 = vmax.f32 %v275_v42, %v276_v41  ;;  %v503_v40 = vld [vmem:[#allocation2 + $0x28] sm:$0xff]  ;;  %v935_v42 = vmov 0.0|0.0  }
 0x1d5   :  { %835 = vmatprep.subr.bf16.mxu1 %v935_v42  ;;  %829 = vmatprep.subr.bf16.mxu0 %v935_v42 }
 0x1d6   :  { %v271_v45 = vrot.slane %v270_v43, 2  ;;  %v278_v46 = vrot.slane %v277_v44, 4 }
 0x1d8   :  { %v272_v47 = vmax.f32 %v270_v43, %v271_v45  ;;  %v279_v48 = vmax.f32 %v277_v44, %v278_v46  ;;  %v505_v43 = vld [vmem:[#allocation2 + $0x38] sm:$0xff]  ;;  %v376_v45 = vld [vmem:[#allocation2] sm:$0xff] }
 0x1da   :  { %v273_v49 = vrot.slane %v272_v47, 1  ;;  %v280_v50 = vrot.slane %v279_v48, 2 }
 0x1dc   :  { %v274_v51 = vmax.f32 %v272_v47, %v273_v49  ;;  %v281_v52 = vmax.f32 %v279_v48, %v280_v50  ;;  %v937_v47 = vmov 0.0   ;;  %v378_v48 = vld [vmem:[#allocation2 + $0x10] sm:$0xff]  ;;  %v379_v49 = vld [vmem:[#allocation2 + $0x18] sm:$0xff] }
 0x1dd   :  { %803 = vmatprep.mubr.msk.f32.mxu1 %vm936_vm4, %v937_v47  ;;  %v833_v50 = vpack.c.bf16 %v379_v49, %v378_v48  ;;  %792 = vmatprep.mubr.msk.f32.mxu0 %vm936_vm4, %v937_v47 }
 0x1de   :  { %v284_v53 = vsub.f32 %v247_v32, %v274_v51  ;;  %v285_v54 = vsub.f32 %v252_v30, %v274_v51  ;;  %v282_v55 = vrot.slane %v281_v52, 1 }
 0x1e0   :  { %v288_v57 = vmul.f32 1.442695, %v284_v53  ;;  %v290_v58 = vmul.f32 1.442695, %v285_v54  ;;  %v283_v59 = vmax.f32 %v281_v52, %v282_v55 }
 0x1e2   :  { %869 = vpow2.f32 %v288_v57  ;;  %v286_v60 = vsub.f32 %v257_v39, %v283_v59  ;;  %v287_v61 = vsub.f32 %v262_v37, %v283_v59  ;;  %v502_v39 = vld [vmem:[#allocation2 + $0x20] sm:$0xff] }
 0x1e3   :  { %871 = vpow2.f32 %v290_v58  ;;  %v836_v41 = vpack.c.bf16 %v503_v40, %v502_v39 }
 0x1e4   :  { %v292_v63 = vmul.f32 1.442695, %v286_v60  ;;  %v294_v0 = vmul.f32 1.442695, %v287_v61 }
 0x1e5   :  { %837 = vmatpush3.bf16.msra.mxu1 %v836_v41 }
 0x1e6   :  { %873 = vpow2.f32 %v292_v63  ;;  %838 = vmatprep.subr.bf16.mxu1 %v935_v42 }
 0x1e7   :  { %875 = vpow2.f32 %v294_v0 }
 0x1ec   :  { %v870_v2 = vpop.eup %869 }
 0x1ed   :  { %v872_v3 = vpop.eup %871  ;;  %v309_v4 = vsel %vm265_vm2, %v870_v2, 0.0 }
 0x1ee   :  { %v306_v6 = vsel %vm300_vm3, %v872_v3, 0.0 }
 0x1ef   :  { %v310_v10 = vsel %vm265_vm2, %v306_v6, 0.0 }
 0x1f0   :  { %v874_v11 = vpop.eup %873  ;;  %v311_v12 = vadd.f32 %v310_v10, %v309_v4 }
 0x1f1   :  { %v876_v13 = vpop.eup %875  ;;  %v318_v14 = vsel %vm265_vm2, %v874_v11, 0.0 }
 0x1f2   :  { %v308_v15 = vsel %vm300_vm3, %v876_v13, 0.0  ;;  %v312_v16 = vrot.slane %v311_v12, 4 }
 0x1f3   :  { %v319_v17 = vsel %vm265_vm2, %v308_v15, 0.0 }
 0x1f4   :  { %v313_v18 = vadd.f32 %v312_v16, %v311_v12  ;;  %v320_v19 = vadd.f32 %v319_v17, %v318_v14 }
 0x1f6   :  { %v314_v20 = vrot.slane %v313_v18, 2  ;;  %v321_v21 = vrot.slane %v320_v19, 4 }
 0x1f8   :  { %v315_v22 = vadd.f32 %v314_v20, %v313_v18  ;;  %v322_v23 = vadd.f32 %v321_v21, %v320_v19 }
 0x1fa   :  { %v316_v24 = vrot.slane %v315_v22, 1  ;;  %v323_v25 = vrot.slane %v322_v23, 2 }
 0x1fc   :  { %v317_v28 = vadd.f32 %v316_v24, %v315_v22  ;;  %v324_v29 = vadd.f32 %v323_v25, %v322_v23 }
 0x1fe   :  { %v325_v30 = vrot.slane %v324_v29, 1  ;;  %877 = vrcp.f32 %v317_v28 }
 0x200   :  { %v326_v31 = vadd.f32 %v325_v30, %v324_v29 }
 0x202   :  { %879 = vrcp.f32 %v326_v31 }
 0x208   :  { %v878_v32 = vpop.eup %877 }
 0x209   :  { %v330_v33 = vmul.f32 %v878_v32, %v306_v6  ;;  %v329_v34 = vmul.f32 %v878_v32, %v870_v2 }
 0x20b   :  { %341 = vperm.xlu1 %863, %v330_v33   ;;  %464 = vperm.xlu0 %861, %v329_v34  }
 0x20c   :  { %v880_v35 = vpop.eup %879 }
 0x20d   :  { %v331_v36 = vmul.f32 %v880_v35, %v874_v11  ;;  %v332_v37 = vmul.f32 %v880_v35, %v308_v15 }
 0x20f   :  { %864 = vset.pattern.permute.xlu1 %v934_v38  ;;  %468 = vperm.xlu0 %861, %v330_v33  }
 0x210   :  { %583 = vperm.xlu1 %864, %v329_v34  }
 0x213   :  { %862 = vset.pattern.permute.xlu0 %v933_v27 }
 0x214   :  { %865 = vset.pattern.permute.xlu1 %v932_v26  ;;  %336 = vperm.xlu0 %862, %v329_v34   ;;  %v504_v26 = vld [vmem:[#allocation2 + $0x30] sm:$0xff] }
 0x215   :  { %472 = vperm.xlu1 %865, %v331_v36   ;;  %v839_v44 = vpack.c.bf16 %v505_v43, %v504_v26 }
 0x217   :  { %840 = vmatpush3.bf16.msra.mxu1 %v839_v44  ;;  %v621_v44 = vld [vmem:[#allocation2 + $0x40] sm:$0xff] }
 0x218   :  { %351 = vperm.xlu0 %862, %v332_v37   ;;  %841 = vmatprep.subr.bf16.mxu1 %v935_v42 }
 0x219   :  { %476 = vperm.xlu1 %865, %v332_v37  }
 0x21c   :  { %867 = vset.pattern.permute.xlu0 %v934_v38 }
 0x21d   :  { %866 = vset.pattern.permute.xlu1 %v933_v27  ;;  %587 = vperm.xlu0 %867, %v330_v33   ;;  %v377_v27 = vld [vmem:[#allocation2 + $0x8] sm:$0xff] }
 0x21e   :  { %346 = vperm.xlu1 %866, %v331_v36   ;;  %v830_v46 = vpack.c.bf16 %v377_v27, %v376_v45  ;;  %v622_v45 = vld [vmem:[#allocation2 + $0x48] sm:$0xff] }
 0x220   :  { %831 = vmatpush3.bf16.msra.mxu0 %v830_v46 }
 0x221   :  { %832 = vmatprep.subr.bf16.mxu0 %v935_v42 }
 0x222   :  { %868 = vset.pattern.permute.xlu1 %v934_v38 }
 0x223   :  { %591 = vperm.xlu1 %868, %v331_v36  }
 0x224   :  { %834 = vmatpush3.bf16.msra.mxu0 %v833_v50 }
 0x227   :  { %595 = vperm.xlu1 %868, %v332_v37  }
 0x28a   :  { %v342_v51 = vpop.permute.xlu1 %341  ;;  %v465_v52 = vpop.permute.xlu0 %464 }
 0x28b   :  { %v479_v53 = vmul.f32 %v465_v52, %v1006_v5  ;;  %v355_v59 = vmul.f32 %v342_v51, %v1013_v7 }
 0x28d   :  { %v483_v57 = vsel %vm56_vm0, %v479_v53, 0.0  ;;  %v359_v1 = vsel %vm56_vm0, %v355_v59, 0.0  ;;  %v842_v53 = vpack.c.bf16 %v622_v45, %v621_v44 }
 0x28e   :  { %v469_v54 = vpop.permute.xlu0 %468 }
 0x28f   :  { %v480_v55 = vmul.f32 %v469_v54, %v1013_v7  ;;  %v584_v56 = vpop.permute.xlu1 %583 }
 0x290   :  { %v598_v15 = vmul.f32 %v584_v56, %v1006_v5 }
 0x291   :  { %v484_v58 = vsel %vm56_vm0, %v480_v55, 0.0 }
 0x292   :  { %v485_v60 = vadd.f32 %v484_v58, %v483_v57  ;;  %v602_v29 = vsel %vm56_vm0, %v598_v15, 0.0  ;;  %v623_v58 = vld [vmem:[#allocation2 + $0x50] sm:$0xff] }
 0x293   :  { %v337_v61 = vpop.permute.xlu0 %336 }
 0x294   :  { %v486_v62 = vrot.slane %v485_v60, 4  ;;  %v354_v63 = vmul.f32 %v337_v61, %v1006_v5  ;;  %v473_v0 = vpop.permute.xlu1 %472 }
 0x295   :  { %v481_v6 = vmul.f32 %v473_v0, %v1018_v8 }
 0x296   :  { %v358_v2 = vsel %vm56_vm0, %v354_v63, 0.0  ;;  %v487_v3 = vadd.f32 %v486_v62, %v485_v60 }
 0x297   :  { %v360_v4 = vadd.f32 %v359_v1, %v358_v2  ;;  %v352_v10 = vpop.permute.xlu0 %351  ;;  %v492_v16 = vsel %vm56_vm0, %v481_v6, 0.0 }
 0x298   :  { %v477_v11 = vpop.permute.xlu1 %476  ;;  %v488_v14 = vrot.slane %v487_v3, 2  ;;  %v357_v18 = vmul.f32 %v352_v10, %v1027_v9 }
 0x299   :  { %v361_v12 = vrot.slane %v360_v4, 4  ;;  %v482_v13 = vmul.f32 %v477_v11, %v1027_v9 }
 0x29a   :  { %v489_v28 = vadd.f32 %v488_v14, %v487_v3  ;;  %v368_v30 = vsel %vm56_vm0, %v357_v18, 0.0 }
 0x29b   :  { %v493_v17 = vsel %vm56_vm0, %v482_v13, 0.0  ;;  %v362_v21 = vadd.f32 %v361_v12, %v360_v4 }
 0x29c   :  { %v494_v19 = vadd.f32 %v493_v17, %v492_v16  ;;  %v588_v20 = vpop.permute.xlu0 %587  ;;  %v490_v39 = vrot.slane %v489_v28, 1 }
 0x29d   :  { %v599_v22 = vmul.f32 %v588_v20, %v1013_v7  ;;  %v347_v23 = vpop.permute.xlu1 %346  ;;  %v363_v34 = vrot.slane %v362_v21, 2 }
 0x29e   :  { %v495_v24 = vrot.slane %v494_v19, 4  ;;  %v356_v25 = vmul.f32 %v347_v23, %v1018_v8  ;;  %v491_v51 = vadd.f32 %v490_v39, %v489_v28 }
 0x29f   :  { %v603_v5 = vsel %vm56_vm0, %v599_v22, 0.0  ;;  %v364_v41 = vadd.f32 %v363_v34, %v362_v21 }
 0x2a0   :  { %v496_v31 = vadd.f32 %v495_v24, %v494_v19  ;;  %v604_v32 = vadd.f32 %v603_v5, %v602_v29  ;;  %v367_v33 = vsel %vm56_vm0, %v356_v25, 0.0 }
 0x2a1   :  { %v369_v35 = vadd.f32 %v368_v30, %v367_v33  ;;  %v365_v54 = vrot.slane %v364_v41, 1 }
 0x2a2   :  { %v497_v36 = vrot.slane %v496_v31, 2  ;;  %v605_v37 = vrot.slane %v604_v32, 4  ;;  %v592_v7 = vpop.permute.xlu1 %591 }
 0x2a3   :  { %v370_v38 = vrot.slane %v369_v35, 4  ;;  %v600_v43 = vmul.f32 %v592_v7, %v1018_v8  ;;  %v624_v8 = vld [vmem:[#allocation2 + $0x58] sm:$0xff]  ;;  %v366_v0 = vadd.f32 %v365_v54, %v364_v41 }
 0x2a4   :  { %v498_v40 = vadd.f32 %v497_v36, %v496_v31  ;;  %v606_v46 = vadd.f32 %v605_v37, %v604_v32  ;;  %v845_v63 = vpack.c.bf16 %v624_v8, %v623_v58 }
 0x2a5   :  { %v371_v26 = vadd.f32 %v370_v38, %v369_v35  ;;  %v611_v56 = vsel %vm56_vm0, %v600_v43, 0.0 }
 0x2a6   :  { %v499_v27 = vrot.slane %v498_v40, 1  ;;  %v596_v48 = vpop.permute.xlu1 %595  ;;  %v607_v59 = vrot.slane %v606_v46, 2 }
 0x2a7   :  { %v372_v49 = vrot.slane %v371_v26, 2  ;;  %v601_v50 = vmul.f32 %v596_v48, %v1027_v9 }
 0x2a8   :  { %v500_v52 = vadd.f32 %v499_v27, %v498_v40  ;;  %v608_v2 = vadd.f32 %v607_v59, %v606_v46 }
 0x2a9   :  { %v373_v55 = vadd.f32 %v372_v49, %v371_v26  ;;  %v612_v57 = vsel %vm56_vm0, %v601_v50, 0.0 }
 0x2aa   :  { %v613_v60 = vadd.f32 %v612_v57, %v611_v56  ;;  %v508_v61 = vsel %vm382_vm5, %v500_v52, %v491_v51  ;;  %v609_v10 = vrot.slane %v608_v2, 1 }
 0x2ab   :  { %v374_v62 = vrot.slane %v373_v55, 1  ;;  %804 = vmatmul.mubr.msk.f32.vlgmr.msra.gmra.mrb[4].mxu1 %vm56_vm0, %v508_v61 }
 0x2ac   :  { %v614_v9 = vrot.slane %v613_v60, 4  ;;  %843 = vmatpush3.bf16.msra.mxu1 %v842_v53  ;;  %814 = vmatprep.mubr.msk.f32.mxu1 %vm936_vm4, %v937_v47  ;;  %v610_v13 = vadd.f32 %v609_v10, %v608_v2 }
 0x2ad   :  { %v375_v1 = vadd.f32 %v374_v62, %v373_v55  ;;  %844 = vmatprep.subr.bf16.mxu1 %v935_v42  ;;  %v728_v42 = vld [vmem:[%s1119_s6] ss:$0 sm:$0xff] }
 0x2ae   :  { %v615_v3 = vadd.f32 %v614_v9, %v613_v60 }
 0x2af   :  { %v383_v4 = vsel %vm382_vm5, %v375_v1, %v366_v0 }
 0x2b0   :  { %v616_v6 = vrot.slane %v615_v3, 2  ;;  %793 = vmatmul.mubr.msk.f32.vlgmr.msra.gmra.mrb[4].mxu0 %vm56_vm0, %v383_v4  ;;  %846 = vmatpush3.bf16.msra.mxu1 %v845_v63 }
 0x2b2   :  { %v617_v11 = vadd.f32 %v616_v6, %v615_v3 }
 0x2b4   :  { %v618_v12 = vrot.slane %v617_v11, 1 }
 0x2b6   :  { %v619_v14 = vadd.f32 %v618_v12, %v617_v11 }
 0x2b8   :  { %v627_v15 = vsel %vm382_vm5, %v619_v14, %v610_v13 }
 0x2b9   :  { %815 = vmatmul.mubr.msk.f32.vlgmr.msra.gmra.mrb[4].mxu1 %vm56_vm0, %v627_v15 }
 0x383   :  { %v452_v47 = vpop.f32.mrb[4].mxu0 }
 0x384   :  { %v794_v16 = vpop.f32.mrb[5].mxu0  ;;  %v462_v17 = vadd.f32 %v728_v42, %v452_v47 }
 0x38c   :  { %v696_v18 = vpop.f32.mrb[4].mxu1 }
 0x38d   :  { %v848_v19 = vadd.f32 %v696_v18, %v462_v17  ;;  %v816_v20 = vpop.f32.mrb[5].mxu1 }
 0x38f   :  { %701 = vst [vmem:[#allocation5] sm:$0x3] %v848_v19 }
 0x390   :  { %914 = shalt.err (!%p911_p12)
}
 0x391   :  { %s915_s17 = scalar_lea.hbm %s1120_s7, 32 }
 0x392   :  { %p916_p13 = scmp.ne.s32.totalorder %s1120_s7, %s915_s17  ;;  %p919_p0 = scmp.lt.u32.totalorder %s915_s17, %s1120_s7 }
 0x394   :  { %p921_p1 = pnand %p919_p0, %p916_p13 }
 0x396   :  { %924 = shalt.err (!%p921_p1)
}
 0x397   :  { %711 = dma.vmem_to_hbm [thread:$0]  %s709_s13, 32, %s1120_s7, [#allocation4]  }
 0x398   :  { %927 = dma.done.wait [#allocation4], 32  }
 0x399   :  { %928 = vsyncadd [#allocation4], 4294967264 }
 0x39a   :  { %715 = vsyncpa [#allocation3], 1 }
 0x39b   :  { %716 = vsyncpa [#allocation4], 1 }

</bundles_post_ra>
